<compile_context>
chip_gen: v5e
topology: v5e:2x2
jax: 0.10.0
libtpu: 0.0.40
codegen_flags: <defaults>
</compile_context>

<pallas_src>
import jax
import jax.numpy as jnp
from jax.experimental import pallas as pl
from jax.experimental.pallas import tpu as pltpu

IN_F = 4
HID = 10
OUT_F = 3
LANES = 128

# Offsets into the packed parameter vector (w1 | b1 | w2 | b2), all f32.
_W1_OFF = 0
_B1_OFF = _W1_OFF + IN_F * HID
_W2_OFF = _B1_OFF + HID
_B2_OFF = _W2_OFF + HID * OUT_F
_N_PARAMS = _B2_OFF + OUT_F          # 83 scalars, < 512 B of SMEM


def iris_mlp_kernel(params_ref, x_ref, o_ref):
    """params_ref: SMEM (83,) f32; x_ref: VMEM (4, TBS, 128); o_ref: VMEM (3, TBS, 128)."""
    tbs = x_ref.shape[1]
    # Strip size: largest of {32,16,8} sublanes that divides the tile.  Keeps
    # the per-iteration live set at ~(4+1+3) slabs * (strip/8) vregs <= ~32.
    if tbs % 32 == 0:
        strip = 32
    elif tbs % 16 == 0:
        strip = 16
    else:
        strip = 8
    n_strips = tbs // strip

    @pl.loop(0, n_strips)
    def _(r):
        row = pl.multiple_of(r * strip, strip)
        # One lane-dense slab per input feature (lane axis = batch).
        xs = [x_ref[i, pl.ds(row, strip), :] for i in range(IN_F)]   # (strip,128) f32
        # Output accumulators start at the broadcast bias b2[k].
        outs = [jnp.full((strip, LANES), params_ref[_B2_OFF + k], jnp.float32)
                for k in range(OUT_F)]
        # fc1 + ReLU + fc2 fused per hidden unit: h_j is consumed immediately.
        for j in range(HID):
            h = xs[0] * params_ref[_W1_OFF + 0 * HID + j]
            for i in range(1, IN_F):
                h = h + xs[i] * params_ref[_W1_OFF + i * HID + j]
            h = jnp.maximum(h + params_ref[_B1_OFF + j], 0.0)
            for k in range(OUT_F):
                outs[k] = outs[k] + h * params_ref[_W2_OFF + j * OUT_F + k]
        for k in range(OUT_F):
            o_ref[k, pl.ds(row, strip), :] = outs[k].astype(o_ref.dtype)


def _round_up(v, m):
    return pl.cdiv(v, m) * m


def iris_mlp_feature_major(xt, w1, b1, w2, b2, *, block_rows=512):
    """Feature-major forward: xt [4, B] f32 -> [3, B] f32.

    Preferred entry point (per perf review): no sample-major <-> feature-major
    transposes; the batch maps straight onto sublanes x lanes.
    """
    assert xt.shape[0] == IN_F
    assert block_rows % 8 == 0
    B = xt.shape[1]

    # Pack all weights/biases into one flat f32 vector (SMEM-resident, shared
    # across the whole grid).  Weights stored [in, out] (= torch weight.T).
    params = jnp.concatenate(
        [w1.reshape(-1), b1.reshape(-1), w2.reshape(-1), b2.reshape(-1)]
    ).astype(jnp.float32)
    assert params.shape[0] == _N_PARAMS

    # Tile: as big as block_rows allows, but capped at ~half the rows so the
    # grid keeps >=2 steps whenever there is more than one minimal tile of work
    # (keeps both v7x TensorCores busy under "parallel" semantics).
    rows_needed = pl.cdiv(B, LANES)
    tbs = min(block_rows, max(8, _round_up(pl.cdiv(rows_needed, 2), 8)))
    tile = tbs * LANES
    b_pad = _round_up(B, tile)
    nb = b_pad // LANES

    xp = xt.astype(jnp.float32)
    if b_pad != B:
        xp = jnp.pad(xp, ((0, 0), (0, b_pad - B)))
    xp = xp.reshape(IN_F, nb, LANES)     # free: contiguous split of the batch axis

    out = pl.pallas_call(
        iris_mlp_kernel,
        out_shape=jax.ShapeDtypeStruct((OUT_F, nb, LANES), jnp.float32),
        grid=(nb // tbs,),
        in_specs=[
            pl.BlockSpec(memory_space=pltpu.MemorySpace.SMEM),      # params stay resident
            pl.BlockSpec((IN_F, tbs, LANES), lambda b: (0, b, 0)),  # x tile
        ],
        out_specs=pl.BlockSpec((OUT_F, tbs, LANES), lambda b: (0, b, 0)),
        compiler_params=pltpu.CompilerParams(
            dimension_semantics=("parallel",)),                     # 2x on v7x megacore
    )(params, xp)

    # Drop padded samples; stay feature-major.
    return out.reshape(OUT_F, b_pad)[:, :B]


def iris_mlp(x, w1, b1, w2, b2, *, block_rows=512):
    """PyTorch-layout forward: x [B, 4] -> [B, 3] (matches IrisNN.forward).

    The two transposes here are pure layout plumbing required by nn.Linear's
    sample-major convention; producers/consumers that can work feature-major
    should call iris_mlp_feature_major directly and skip them.
    """
    yt = iris_mlp_feature_major(x.astype(jnp.float32).T, w1, b1, w2, b2,
                                block_rows=block_rows)
    return yt.T


def init_params(key):
    """Deterministic init mirroring nn.Linear (weights stored as [in, out])."""
    k1, k2, k3, k4 = jax.random.split(key, 4)
    bound1 = 1.0 / jnp.sqrt(4.0)
    bound2 = 1.0 / jnp.sqrt(10.0)
    w1 = jax.random.uniform(k1, (IN_F, HID), jnp.float32, -bound1, bound1)
    b1 = jax.random.uniform(k2, (HID,), jnp.float32, -bound1, bound1)
    w2 = jax.random.uniform(k3, (HID, OUT_F), jnp.float32, -bound2, bound2)
    b2 = jax.random.uniform(k4, (OUT_F,), jnp.float32, -bound2, bound2)
    return w1, b1, w2, b2


def ref_forward(x, w1, b1, w2, b2):
    return jnp.maximum(x @ w1 + b1, 0.0) @ w2 + b2


if __name__ == "__main__":
    key = jax.random.PRNGKey(0)
    k_params, k_x1, k_x2 = jax.random.split(key, 3)
    w1, b1, w2, b2 = init_params(k_params)

    fwd = jax.jit(iris_mlp)

    # Small batch (padding path, single grid step, strip loop of 1).
    x_small = jax.random.normal(k_x1, (8, IN_F), jnp.float32)
    out_small = jax.block_until_ready(fwd(x_small, w1, b1, w2, b2))
    assert out_small.shape == (8, OUT_F)
    assert jnp.allclose(out_small, ref_forward(x_small, w1, b1, w2, b2),
                        atol=1e-5, rtol=1e-5)

    # Larger, non-aligned batch (2 grid steps + tail padding + multi-strip loop).
    x_big = jax.random.normal(k_x2, (5000, IN_F), jnp.float32)
    out_big = jax.block_until_ready(fwd(x_big, w1, b1, w2, b2))
    assert out_big.shape == (5000, OUT_F)
    assert jnp.allclose(out_big, ref_forward(x_big, w1, b1, w2, b2),
                        atol=1e-5, rtol=1e-5)

    print("KERNEL_OK")
</pallas_src>

<mosaic_0001>
module attributes {stable_mosaic.version = 11 : i64} {
  func.func @iris_mlp_kernel(%arg0: i32, %arg1: memref<83xf32, #tpu.memory_space<smem>>, %arg2: memref<4x8x128xf32, #tpu.memory_space<vmem>>, %arg3: memref<3x8x128xf32, #tpu.memory_space<vmem>>) attributes {dimension_semantics = [#tpu.dimension_semantics<parallel>], iteration_bounds = array<i64: 1>, scalar_prefetch = 0 : i64, scratch_operands = 0 : i64, tpu.core_type = #tpu.core_type<tc>, window_params = [{transform_indices = @transform_0, window_bounds = array<i64: 83>}, {transform_indices = @transform_1, window_bounds = array<i64: 4, 8, 128>}, {transform_indices = @transform_2, window_bounds = array<i64: 3, 8, 128>}]} {
    %c0_i32 = arith.constant 0 : i32
    %c1_i32 = arith.constant 1 : i32
    %0 = arith.muli %c0_i32, %c1_i32 : i32
    %c0_i32_0 = arith.constant 0 : i32
    %1 = arith.addi %c0_i32_0, %0 : i32
    %c8_i32 = arith.constant 8 : i32
    %2 = arith.muli %1, %c8_i32 : i32
    %3 = tpu.assume_multiple %2, 8 : i32
    %c0 = arith.constant 0 : index
    %4 = arith.index_cast %3 : i32 to index
    %c0_1 = arith.constant 0 : index
    %5 = vector.load %arg2[%c0, %4, %c0_1] : memref<4x8x128xf32, #tpu.memory_space<vmem>>, vector<1x8x128xf32>
    %6 = vector.shape_cast %5 : vector<1x8x128xf32> to vector<8x128xf32>
    %c1 = arith.constant 1 : index
    %7 = arith.index_cast %3 : i32 to index
    %c0_2 = arith.constant 0 : index
    %8 = vector.load %arg2[%c1, %7, %c0_2] : memref<4x8x128xf32, #tpu.memory_space<vmem>>, vector<1x8x128xf32>
    %9 = vector.shape_cast %8 : vector<1x8x128xf32> to vector<8x128xf32>
    %c2 = arith.constant 2 : index
    %10 = arith.index_cast %3 : i32 to index
    %c0_3 = arith.constant 0 : index
    %11 = vector.load %arg2[%c2, %10, %c0_3] : memref<4x8x128xf32, #tpu.memory_space<vmem>>, vector<1x8x128xf32>
    %12 = vector.shape_cast %11 : vector<1x8x128xf32> to vector<8x128xf32>
    %c3 = arith.constant 3 : index
    %13 = arith.index_cast %3 : i32 to index
    %c0_4 = arith.constant 0 : index
    %14 = vector.load %arg2[%c3, %13, %c0_4] : memref<4x8x128xf32, #tpu.memory_space<vmem>>, vector<1x8x128xf32>
    %15 = vector.shape_cast %14 : vector<1x8x128xf32> to vector<8x128xf32>
    %c80 = arith.constant 80 : index
    %16 = memref.load %arg1[%c80] : memref<83xf32, #tpu.memory_space<smem>>
    %17 = vector.broadcast %16 : f32 to vector<8x128xf32>
    %c81 = arith.constant 81 : index
    %18 = memref.load %arg1[%c81] : memref<83xf32, #tpu.memory_space<smem>>
    %19 = vector.broadcast %18 : f32 to vector<8x128xf32>
    %c82 = arith.constant 82 : index
    %20 = memref.load %arg1[%c82] : memref<83xf32, #tpu.memory_space<smem>>
    %21 = vector.broadcast %20 : f32 to vector<8x128xf32>
    %c0_5 = arith.constant 0 : index
    %22 = memref.load %arg1[%c0_5] : memref<83xf32, #tpu.memory_space<smem>>
    %23 = vector.broadcast %22 : f32 to vector<8x128xf32>
    %24 = arith.mulf %6, %23 : vector<8x128xf32>
    %c10 = arith.constant 10 : index
    %25 = memref.load %arg1[%c10] : memref<83xf32, #tpu.memory_space<smem>>
    %26 = vector.broadcast %25 : f32 to vector<8x128xf32>
    %27 = arith.mulf %9, %26 : vector<8x128xf32>
    %28 = arith.addf %24, %27 : vector<8x128xf32>
    %c20 = arith.constant 20 : index
    %29 = memref.load %arg1[%c20] : memref<83xf32, #tpu.memory_space<smem>>
    %30 = vector.broadcast %29 : f32 to vector<8x128xf32>
    %31 = arith.mulf %12, %30 : vector<8x128xf32>
    %32 = arith.addf %28, %31 : vector<8x128xf32>
    %c30 = arith.constant 30 : index
    %33 = memref.load %arg1[%c30] : memref<83xf32, #tpu.memory_space<smem>>
    %34 = vector.broadcast %33 : f32 to vector<8x128xf32>
    %35 = arith.mulf %15, %34 : vector<8x128xf32>
    %36 = arith.addf %32, %35 : vector<8x128xf32>
    %c40 = arith.constant 40 : index
    %37 = memref.load %arg1[%c40] : memref<83xf32, #tpu.memory_space<smem>>
    %38 = vector.broadcast %37 : f32 to vector<8x128xf32>
    %39 = arith.addf %36, %38 : vector<8x128xf32>
    %cst = arith.constant 0.000000e+00 : f32
    %40 = vector.broadcast %cst : f32 to vector<8x128xf32>
    %41 = arith.maximumf %39, %40 : vector<8x128xf32>
    %c50 = arith.constant 50 : index
    %42 = memref.load %arg1[%c50] : memref<83xf32, #tpu.memory_space<smem>>
    %43 = vector.broadcast %42 : f32 to vector<8x128xf32>
    %44 = arith.mulf %41, %43 : vector<8x128xf32>
    %45 = arith.addf %17, %44 : vector<8x128xf32>
    %c51 = arith.constant 51 : index
    %46 = memref.load %arg1[%c51] : memref<83xf32, #tpu.memory_space<smem>>
    %47 = vector.broadcast %46 : f32 to vector<8x128xf32>
    %48 = arith.mulf %41, %47 : vector<8x128xf32>
    %49 = arith.addf %19, %48 : vector<8x128xf32>
    %c52 = arith.constant 52 : index
    %50 = memref.load %arg1[%c52] : memref<83xf32, #tpu.memory_space<smem>>
    %51 = vector.broadcast %50 : f32 to vector<8x128xf32>
    %52 = arith.mulf %41, %51 : vector<8x128xf32>
    %53 = arith.addf %21, %52 : vector<8x128xf32>
    %c1_6 = arith.constant 1 : index
    %54 = memref.load %arg1[%c1_6] : memref<83xf32, #tpu.memory_space<smem>>
    %55 = vector.broadcast %54 : f32 to vector<8x128xf32>
    %56 = arith.mulf %6, %55 : vector<8x128xf32>
    %c11 = arith.constant 11 : index
    %57 = memref.load %arg1[%c11] : memref<83xf32, #tpu.memory_space<smem>>
    %58 = vector.broadcast %57 : f32 to vector<8x128xf32>
    %59 = arith.mulf %9, %58 : vector<8x128xf32>
    %60 = arith.addf %56, %59 : vector<8x128xf32>
    %c21 = arith.constant 21 : index
    %61 = memref.load %arg1[%c21] : memref<83xf32, #tpu.memory_space<smem>>
    %62 = vector.broadcast %61 : f32 to vector<8x128xf32>
    %63 = arith.mulf %12, %62 : vector<8x128xf32>
    %64 = arith.addf %60, %63 : vector<8x128xf32>
    %c31 = arith.constant 31 : index
    %65 = memref.load %arg1[%c31] : memref<83xf32, #tpu.memory_space<smem>>
    %66 = vector.broadcast %65 : f32 to vector<8x128xf32>
    %67 = arith.mulf %15, %66 : vector<8x128xf32>
    %68 = arith.addf %64, %67 : vector<8x128xf32>
    %c41 = arith.constant 41 : index
    %69 = memref.load %arg1[%c41] : memref<83xf32, #tpu.memory_space<smem>>
    %70 = vector.broadcast %69 : f32 to vector<8x128xf32>
    %71 = arith.addf %68, %70 : vector<8x128xf32>
    %cst_7 = arith.constant 0.000000e+00 : f32
    %72 = vector.broadcast %cst_7 : f32 to vector<8x128xf32>
    %73 = arith.maximumf %71, %72 : vector<8x128xf32>
    %c53 = arith.constant 53 : index
    %74 = memref.load %arg1[%c53] : memref<83xf32, #tpu.memory_space<smem>>
    %75 = vector.broadcast %74 : f32 to vector<8x128xf32>
    %76 = arith.mulf %73, %75 : vector<8x128xf32>
    %77 = arith.addf %45, %76 : vector<8x128xf32>
    %c54 = arith.constant 54 : index
    %78 = memref.load %arg1[%c54] : memref<83xf32, #tpu.memory_space<smem>>
    %79 = vector.broadcast %78 : f32 to vector<8x128xf32>
    %80 = arith.mulf %73, %79 : vector<8x128xf32>
    %81 = arith.addf %49, %80 : vector<8x128xf32>
    %c55 = arith.constant 55 : index
    %82 = memref.load %arg1[%c55] : memref<83xf32, #tpu.memory_space<smem>>
    %83 = vector.broadcast %82 : f32 to vector<8x128xf32>
    %84 = arith.mulf %73, %83 : vector<8x128xf32>
    %85 = arith.addf %53, %84 : vector<8x128xf32>
    %c2_8 = arith.constant 2 : index
    %86 = memref.load %arg1[%c2_8] : memref<83xf32, #tpu.memory_space<smem>>
    %87 = vector.broadcast %86 : f32 to vector<8x128xf32>
    %88 = arith.mulf %6, %87 : vector<8x128xf32>
    %c12 = arith.constant 12 : index
    %89 = memref.load %arg1[%c12] : memref<83xf32, #tpu.memory_space<smem>>
    %90 = vector.broadcast %89 : f32 to vector<8x128xf32>
    %91 = arith.mulf %9, %90 : vector<8x128xf32>
    %92 = arith.addf %88, %91 : vector<8x128xf32>
    %c22 = arith.constant 22 : index
    %93 = memref.load %arg1[%c22] : memref<83xf32, #tpu.memory_space<smem>>
    %94 = vector.broadcast %93 : f32 to vector<8x128xf32>
    %95 = arith.mulf %12, %94 : vector<8x128xf32>
    %96 = arith.addf %92, %95 : vector<8x128xf32>
    %c32 = arith.constant 32 : index
    %97 = memref.load %arg1[%c32] : memref<83xf32, #tpu.memory_space<smem>>
    %98 = vector.broadcast %97 : f32 to vector<8x128xf32>
    %99 = arith.mulf %15, %98 : vector<8x128xf32>
    %100 = arith.addf %96, %99 : vector<8x128xf32>
    %c42 = arith.constant 42 : index
    %101 = memref.load %arg1[%c42] : memref<83xf32, #tpu.memory_space<smem>>
    %102 = vector.broadcast %101 : f32 to vector<8x128xf32>
    %103 = arith.addf %100, %102 : vector<8x128xf32>
    %cst_9 = arith.constant 0.000000e+00 : f32
    %104 = vector.broadcast %cst_9 : f32 to vector<8x128xf32>
    %105 = arith.maximumf %103, %104 : vector<8x128xf32>
    %c56 = arith.constant 56 : index
    %106 = memref.load %arg1[%c56] : memref<83xf32, #tpu.memory_space<smem>>
    %107 = vector.broadcast %106 : f32 to vector<8x128xf32>
    %108 = arith.mulf %105, %107 : vector<8x128xf32>
    %109 = arith.addf %77, %108 : vector<8x128xf32>
    %c57 = arith.constant 57 : index
    %110 = memref.load %arg1[%c57] : memref<83xf32, #tpu.memory_space<smem>>
    %111 = vector.broadcast %110 : f32 to vector<8x128xf32>
    %112 = arith.mulf %105, %111 : vector<8x128xf32>
    %113 = arith.addf %81, %112 : vector<8x128xf32>
    %c58 = arith.constant 58 : index
    %114 = memref.load %arg1[%c58] : memref<83xf32, #tpu.memory_space<smem>>
    %115 = vector.broadcast %114 : f32 to vector<8x128xf32>
    %116 = arith.mulf %105, %115 : vector<8x128xf32>
    %117 = arith.addf %85, %116 : vector<8x128xf32>
    %c3_10 = arith.constant 3 : index
    %118 = memref.load %arg1[%c3_10] : memref<83xf32, #tpu.memory_space<smem>>
    %119 = vector.broadcast %118 : f32 to vector<8x128xf32>
    %120 = arith.mulf %6, %119 : vector<8x128xf32>
    %c13 = arith.constant 13 : index
    %121 = memref.load %arg1[%c13] : memref<83xf32, #tpu.memory_space<smem>>
    %122 = vector.broadcast %121 : f32 to vector<8x128xf32>
    %123 = arith.mulf %9, %122 : vector<8x128xf32>
    %124 = arith.addf %120, %123 : vector<8x128xf32>
    %c23 = arith.constant 23 : index
    %125 = memref.load %arg1[%c23] : memref<83xf32, #tpu.memory_space<smem>>
    %126 = vector.broadcast %125 : f32 to vector<8x128xf32>
    %127 = arith.mulf %12, %126 : vector<8x128xf32>
    %128 = arith.addf %124, %127 : vector<8x128xf32>
    %c33 = arith.constant 33 : index
    %129 = memref.load %arg1[%c33] : memref<83xf32, #tpu.memory_space<smem>>
    %130 = vector.broadcast %129 : f32 to vector<8x128xf32>
    %131 = arith.mulf %15, %130 : vector<8x128xf32>
    %132 = arith.addf %128, %131 : vector<8x128xf32>
    %c43 = arith.constant 43 : index
    %133 = memref.load %arg1[%c43] : memref<83xf32, #tpu.memory_space<smem>>
    %134 = vector.broadcast %133 : f32 to vector<8x128xf32>
    %135 = arith.addf %132, %134 : vector<8x128xf32>
    %cst_11 = arith.constant 0.000000e+00 : f32
    %136 = vector.broadcast %cst_11 : f32 to vector<8x128xf32>
    %137 = arith.maximumf %135, %136 : vector<8x128xf32>
    %c59 = arith.constant 59 : index
    %138 = memref.load %arg1[%c59] : memref<83xf32, #tpu.memory_space<smem>>
    %139 = vector.broadcast %138 : f32 to vector<8x128xf32>
    %140 = arith.mulf %137, %139 : vector<8x128xf32>
    %141 = arith.addf %109, %140 : vector<8x128xf32>
    %c60 = arith.constant 60 : index
    %142 = memref.load %arg1[%c60] : memref<83xf32, #tpu.memory_space<smem>>
    %143 = vector.broadcast %142 : f32 to vector<8x128xf32>
    %144 = arith.mulf %137, %143 : vector<8x128xf32>
    %145 = arith.addf %113, %144 : vector<8x128xf32>
    %c61 = arith.constant 61 : index
    %146 = memref.load %arg1[%c61] : memref<83xf32, #tpu.memory_space<smem>>
    %147 = vector.broadcast %146 : f32 to vector<8x128xf32>
    %148 = arith.mulf %137, %147 : vector<8x128xf32>
    %149 = arith.addf %117, %148 : vector<8x128xf32>
    %c4 = arith.constant 4 : index
    %150 = memref.load %arg1[%c4] : memref<83xf32, #tpu.memory_space<smem>>
    %151 = vector.broadcast %150 : f32 to vector<8x128xf32>
    %152 = arith.mulf %6, %151 : vector<8x128xf32>
    %c14 = arith.constant 14 : index
    %153 = memref.load %arg1[%c14] : memref<83xf32, #tpu.memory_space<smem>>
    %154 = vector.broadcast %153 : f32 to vector<8x128xf32>
    %155 = arith.mulf %9, %154 : vector<8x128xf32>
    %156 = arith.addf %152, %155 : vector<8x128xf32>
    %c24 = arith.constant 24 : index
    %157 = memref.load %arg1[%c24] : memref<83xf32, #tpu.memory_space<smem>>
    %158 = vector.broadcast %157 : f32 to vector<8x128xf32>
    %159 = arith.mulf %12, %158 : vector<8x128xf32>
    %160 = arith.addf %156, %159 : vector<8x128xf32>
    %c34 = arith.constant 34 : index
    %161 = memref.load %arg1[%c34] : memref<83xf32, #tpu.memory_space<smem>>
    %162 = vector.broadcast %161 : f32 to vector<8x128xf32>
    %163 = arith.mulf %15, %162 : vector<8x128xf32>
    %164 = arith.addf %160, %163 : vector<8x128xf32>
    %c44 = arith.constant 44 : index
    %165 = memref.load %arg1[%c44] : memref<83xf32, #tpu.memory_space<smem>>
    %166 = vector.broadcast %165 : f32 to vector<8x128xf32>
    %167 = arith.addf %164, %166 : vector<8x128xf32>
    %cst_12 = arith.constant 0.000000e+00 : f32
    %168 = vector.broadcast %cst_12 : f32 to vector<8x128xf32>
    %169 = arith.maximumf %167, %168 : vector<8x128xf32>
    %c62 = arith.constant 62 : index
    %170 = memref.load %arg1[%c62] : memref<83xf32, #tpu.memory_space<smem>>
    %171 = vector.broadcast %170 : f32 to vector<8x128xf32>
    %172 = arith.mulf %169, %171 : vector<8x128xf32>
    %173 = arith.addf %141, %172 : vector<8x128xf32>
    %c63 = arith.constant 63 : index
    %174 = memref.load %arg1[%c63] : memref<83xf32, #tpu.memory_space<smem>>
    %175 = vector.broadcast %174 : f32 to vector<8x128xf32>
    %176 = arith.mulf %169, %175 : vector<8x128xf32>
    %177 = arith.addf %145, %176 : vector<8x128xf32>
    %c64 = arith.constant 64 : index
    %178 = memref.load %arg1[%c64] : memref<83xf32, #tpu.memory_space<smem>>
    %179 = vector.broadcast %178 : f32 to vector<8x128xf32>
    %180 = arith.mulf %169, %179 : vector<8x128xf32>
    %181 = arith.addf %149, %180 : vector<8x128xf32>
    %c5 = arith.constant 5 : index
    %182 = memref.load %arg1[%c5] : memref<83xf32, #tpu.memory_space<smem>>
    %183 = vector.broadcast %182 : f32 to vector<8x128xf32>
    %184 = arith.mulf %6, %183 : vector<8x128xf32>
    %c15 = arith.constant 15 : index
    %185 = memref.load %arg1[%c15] : memref<83xf32, #tpu.memory_space<smem>>
    %186 = vector.broadcast %185 : f32 to vector<8x128xf32>
    %187 = arith.mulf %9, %186 : vector<8x128xf32>
    %188 = arith.addf %184, %187 : vector<8x128xf32>
    %c25 = arith.constant 25 : index
    %189 = memref.load %arg1[%c25] : memref<83xf32, #tpu.memory_space<smem>>
    %190 = vector.broadcast %189 : f32 to vector<8x128xf32>
    %191 = arith.mulf %12, %190 : vector<8x128xf32>
    %192 = arith.addf %188, %191 : vector<8x128xf32>
    %c35 = arith.constant 35 : index
    %193 = memref.load %arg1[%c35] : memref<83xf32, #tpu.memory_space<smem>>
    %194 = vector.broadcast %193 : f32 to vector<8x128xf32>
    %195 = arith.mulf %15, %194 : vector<8x128xf32>
    %196 = arith.addf %192, %195 : vector<8x128xf32>
    %c45 = arith.constant 45 : index
    %197 = memref.load %arg1[%c45] : memref<83xf32, #tpu.memory_space<smem>>
    %198 = vector.broadcast %197 : f32 to vector<8x128xf32>
    %199 = arith.addf %196, %198 : vector<8x128xf32>
    %cst_13 = arith.constant 0.000000e+00 : f32
    %200 = vector.broadcast %cst_13 : f32 to vector<8x128xf32>
    %201 = arith.maximumf %199, %200 : vector<8x128xf32>
    %c65 = arith.constant 65 : index
    %202 = memref.load %arg1[%c65] : memref<83xf32, #tpu.memory_space<smem>>
    %203 = vector.broadcast %202 : f32 to vector<8x128xf32>
    %204 = arith.mulf %201, %203 : vector<8x128xf32>
    %205 = arith.addf %173, %204 : vector<8x128xf32>
    %c66 = arith.constant 66 : index
    %206 = memref.load %arg1[%c66] : memref<83xf32, #tpu.memory_space<smem>>
    %207 = vector.broadcast %206 : f32 to vector<8x128xf32>
    %208 = arith.mulf %201, %207 : vector<8x128xf32>
    %209 = arith.addf %177, %208 : vector<8x128xf32>
    %c67 = arith.constant 67 : index
    %210 = memref.load %arg1[%c67] : memref<83xf32, #tpu.memory_space<smem>>
    %211 = vector.broadcast %210 : f32 to vector<8x128xf32>
    %212 = arith.mulf %201, %211 : vector<8x128xf32>
    %213 = arith.addf %181, %212 : vector<8x128xf32>
    %c6 = arith.constant 6 : index
    %214 = memref.load %arg1[%c6] : memref<83xf32, #tpu.memory_space<smem>>
    %215 = vector.broadcast %214 : f32 to vector<8x128xf32>
    %216 = arith.mulf %6, %215 : vector<8x128xf32>
    %c16 = arith.constant 16 : index
    %217 = memref.load %arg1[%c16] : memref<83xf32, #tpu.memory_space<smem>>
    %218 = vector.broadcast %217 : f32 to vector<8x128xf32>
    %219 = arith.mulf %9, %218 : vector<8x128xf32>
    %220 = arith.addf %216, %219 : vector<8x128xf32>
    %c26 = arith.constant 26 : index
    %221 = memref.load %arg1[%c26] : memref<83xf32, #tpu.memory_space<smem>>
    %222 = vector.broadcast %221 : f32 to vector<8x128xf32>
    %223 = arith.mulf %12, %222 : vector<8x128xf32>
    %224 = arith.addf %220, %223 : vector<8x128xf32>
    %c36 = arith.constant 36 : index
    %225 = memref.load %arg1[%c36] : memref<83xf32, #tpu.memory_space<smem>>
    %226 = vector.broadcast %225 : f32 to vector<8x128xf32>
    %227 = arith.mulf %15, %226 : vector<8x128xf32>
    %228 = arith.addf %224, %227 : vector<8x128xf32>
    %c46 = arith.constant 46 : index
    %229 = memref.load %arg1[%c46] : memref<83xf32, #tpu.memory_space<smem>>
    %230 = vector.broadcast %229 : f32 to vector<8x128xf32>
    %231 = arith.addf %228, %230 : vector<8x128xf32>
    %cst_14 = arith.constant 0.000000e+00 : f32
    %232 = vector.broadcast %cst_14 : f32 to vector<8x128xf32>
    %233 = arith.maximumf %231, %232 : vector<8x128xf32>
    %c68 = arith.constant 68 : index
    %234 = memref.load %arg1[%c68] : memref<83xf32, #tpu.memory_space<smem>>
    %235 = vector.broadcast %234 : f32 to vector<8x128xf32>
    %236 = arith.mulf %233, %235 : vector<8x128xf32>
    %237 = arith.addf %205, %236 : vector<8x128xf32>
    %c69 = arith.constant 69 : index
    %238 = memref.load %arg1[%c69] : memref<83xf32, #tpu.memory_space<smem>>
    %239 = vector.broadcast %238 : f32 to vector<8x128xf32>
    %240 = arith.mulf %233, %239 : vector<8x128xf32>
    %241 = arith.addf %209, %240 : vector<8x128xf32>
    %c70 = arith.constant 70 : index
    %242 = memref.load %arg1[%c70] : memref<83xf32, #tpu.memory_space<smem>>
    %243 = vector.broadcast %242 : f32 to vector<8x128xf32>
    %244 = arith.mulf %233, %243 : vector<8x128xf32>
    %245 = arith.addf %213, %244 : vector<8x128xf32>
    %c7 = arith.constant 7 : index
    %246 = memref.load %arg1[%c7] : memref<83xf32, #tpu.memory_space<smem>>
    %247 = vector.broadcast %246 : f32 to vector<8x128xf32>
    %248 = arith.mulf %6, %247 : vector<8x128xf32>
    %c17 = arith.constant 17 : index
    %249 = memref.load %arg1[%c17] : memref<83xf32, #tpu.memory_space<smem>>
    %250 = vector.broadcast %249 : f32 to vector<8x128xf32>
    %251 = arith.mulf %9, %250 : vector<8x128xf32>
    %252 = arith.addf %248, %251 : vector<8x128xf32>
    %c27 = arith.constant 27 : index
    %253 = memref.load %arg1[%c27] : memref<83xf32, #tpu.memory_space<smem>>
    %254 = vector.broadcast %253 : f32 to vector<8x128xf32>
    %255 = arith.mulf %12, %254 : vector<8x128xf32>
    %256 = arith.addf %252, %255 : vector<8x128xf32>
    %c37 = arith.constant 37 : index
    %257 = memref.load %arg1[%c37] : memref<83xf32, #tpu.memory_space<smem>>
    %258 = vector.broadcast %257 : f32 to vector<8x128xf32>
    %259 = arith.mulf %15, %258 : vector<8x128xf32>
    %260 = arith.addf %256, %259 : vector<8x128xf32>
    %c47 = arith.constant 47 : index
    %261 = memref.load %arg1[%c47] : memref<83xf32, #tpu.memory_space<smem>>
    %262 = vector.broadcast %261 : f32 to vector<8x128xf32>
    %263 = arith.addf %260, %262 : vector<8x128xf32>
    %cst_15 = arith.constant 0.000000e+00 : f32
    %264 = vector.broadcast %cst_15 : f32 to vector<8x128xf32>
    %265 = arith.maximumf %263, %264 : vector<8x128xf32>
    %c71 = arith.constant 71 : index
    %266 = memref.load %arg1[%c71] : memref<83xf32, #tpu.memory_space<smem>>
    %267 = vector.broadcast %266 : f32 to vector<8x128xf32>
    %268 = arith.mulf %265, %267 : vector<8x128xf32>
    %269 = arith.addf %237, %268 : vector<8x128xf32>
    %c72 = arith.constant 72 : index
    %270 = memref.load %arg1[%c72] : memref<83xf32, #tpu.memory_space<smem>>
    %271 = vector.broadcast %270 : f32 to vector<8x128xf32>
    %272 = arith.mulf %265, %271 : vector<8x128xf32>
    %273 = arith.addf %241, %272 : vector<8x128xf32>
    %c73 = arith.constant 73 : index
    %274 = memref.load %arg1[%c73] : memref<83xf32, #tpu.memory_space<smem>>
    %275 = vector.broadcast %274 : f32 to vector<8x128xf32>
    %276 = arith.mulf %265, %275 : vector<8x128xf32>
    %277 = arith.addf %245, %276 : vector<8x128xf32>
    %c8 = arith.constant 8 : index
    %278 = memref.load %arg1[%c8] : memref<83xf32, #tpu.memory_space<smem>>
    %279 = vector.broadcast %278 : f32 to vector<8x128xf32>
    %280 = arith.mulf %6, %279 : vector<8x128xf32>
    %c18 = arith.constant 18 : index
    %281 = memref.load %arg1[%c18] : memref<83xf32, #tpu.memory_space<smem>>
    %282 = vector.broadcast %281 : f32 to vector<8x128xf32>
    %283 = arith.mulf %9, %282 : vector<8x128xf32>
    %284 = arith.addf %280, %283 : vector<8x128xf32>
    %c28 = arith.constant 28 : index
    %285 = memref.load %arg1[%c28] : memref<83xf32, #tpu.memory_space<smem>>
    %286 = vector.broadcast %285 : f32 to vector<8x128xf32>
    %287 = arith.mulf %12, %286 : vector<8x128xf32>
    %288 = arith.addf %284, %287 : vector<8x128xf32>
    %c38 = arith.constant 38 : index
    %289 = memref.load %arg1[%c38] : memref<83xf32, #tpu.memory_space<smem>>
    %290 = vector.broadcast %289 : f32 to vector<8x128xf32>
    %291 = arith.mulf %15, %290 : vector<8x128xf32>
    %292 = arith.addf %288, %291 : vector<8x128xf32>
    %c48 = arith.constant 48 : index
    %293 = memref.load %arg1[%c48] : memref<83xf32, #tpu.memory_space<smem>>
    %294 = vector.broadcast %293 : f32 to vector<8x128xf32>
    %295 = arith.addf %292, %294 : vector<8x128xf32>
    %cst_16 = arith.constant 0.000000e+00 : f32
    %296 = vector.broadcast %cst_16 : f32 to vector<8x128xf32>
    %297 = arith.maximumf %295, %296 : vector<8x128xf32>
    %c74 = arith.constant 74 : index
    %298 = memref.load %arg1[%c74] : memref<83xf32, #tpu.memory_space<smem>>
    %299 = vector.broadcast %298 : f32 to vector<8x128xf32>
    %300 = arith.mulf %297, %299 : vector<8x128xf32>
    %301 = arith.addf %269, %300 : vector<8x128xf32>
    %c75 = arith.constant 75 : index
    %302 = memref.load %arg1[%c75] : memref<83xf32, #tpu.memory_space<smem>>
    %303 = vector.broadcast %302 : f32 to vector<8x128xf32>
    %304 = arith.mulf %297, %303 : vector<8x128xf32>
    %305 = arith.addf %273, %304 : vector<8x128xf32>
    %c76 = arith.constant 76 : index
    %306 = memref.load %arg1[%c76] : memref<83xf32, #tpu.memory_space<smem>>
    %307 = vector.broadcast %306 : f32 to vector<8x128xf32>
    %308 = arith.mulf %297, %307 : vector<8x128xf32>
    %309 = arith.addf %277, %308 : vector<8x128xf32>
    %c9 = arith.constant 9 : index
    %310 = memref.load %arg1[%c9] : memref<83xf32, #tpu.memory_space<smem>>
    %311 = vector.broadcast %310 : f32 to vector<8x128xf32>
    %312 = arith.mulf %6, %311 : vector<8x128xf32>
    %c19 = arith.constant 19 : index
    %313 = memref.load %arg1[%c19] : memref<83xf32, #tpu.memory_space<smem>>
    %314 = vector.broadcast %313 : f32 to vector<8x128xf32>
    %315 = arith.mulf %9, %314 : vector<8x128xf32>
    %316 = arith.addf %312, %315 : vector<8x128xf32>
    %c29 = arith.constant 29 : index
    %317 = memref.load %arg1[%c29] : memref<83xf32, #tpu.memory_space<smem>>
    %318 = vector.broadcast %317 : f32 to vector<8x128xf32>
    %319 = arith.mulf %12, %318 : vector<8x128xf32>
    %320 = arith.addf %316, %319 : vector<8x128xf32>
    %c39 = arith.constant 39 : index
    %321 = memref.load %arg1[%c39] : memref<83xf32, #tpu.memory_space<smem>>
    %322 = vector.broadcast %321 : f32 to vector<8x128xf32>
    %323 = arith.mulf %15, %322 : vector<8x128xf32>
    %324 = arith.addf %320, %323 : vector<8x128xf32>
    %c49 = arith.constant 49 : index
    %325 = memref.load %arg1[%c49] : memref<83xf32, #tpu.memory_space<smem>>
    %326 = vector.broadcast %325 : f32 to vector<8x128xf32>
    %327 = arith.addf %324, %326 : vector<8x128xf32>
    %cst_17 = arith.constant 0.000000e+00 : f32
    %328 = vector.broadcast %cst_17 : f32 to vector<8x128xf32>
    %329 = arith.maximumf %327, %328 : vector<8x128xf32>
    %c77 = arith.constant 77 : index
    %330 = memref.load %arg1[%c77] : memref<83xf32, #tpu.memory_space<smem>>
    %331 = vector.broadcast %330 : f32 to vector<8x128xf32>
    %332 = arith.mulf %329, %331 : vector<8x128xf32>
    %333 = arith.addf %301, %332 : vector<8x128xf32>
    %c78 = arith.constant 78 : index
    %334 = memref.load %arg1[%c78] : memref<83xf32, #tpu.memory_space<smem>>
    %335 = vector.broadcast %334 : f32 to vector<8x128xf32>
    %336 = arith.mulf %329, %335 : vector<8x128xf32>
    %337 = arith.addf %305, %336 : vector<8x128xf32>
    %c79 = arith.constant 79 : index
    %338 = memref.load %arg1[%c79] : memref<83xf32, #tpu.memory_space<smem>>
    %339 = vector.broadcast %338 : f32 to vector<8x128xf32>
    %340 = arith.mulf %329, %339 : vector<8x128xf32>
    %341 = arith.addf %309, %340 : vector<8x128xf32>
    %c0_18 = arith.constant 0 : index
    %342 = arith.index_cast %3 : i32 to index
    %c0_19 = arith.constant 0 : index
    %343 = vector.load %arg3[%c0_18, %342, %c0_19] : memref<3x8x128xf32, #tpu.memory_space<vmem>>, vector<1x8x128xf32>
    %344 = vector.shape_cast %343 : vector<1x8x128xf32> to vector<8x128xf32>
    %345 = vector.shape_cast %333 : vector<8x128xf32> to vector<1x8x128xf32>
    tpu.vector_store %arg3[%c0_18, %342, %c0_19], %345 {strides = array<i32>} : memref<3x8x128xf32, #tpu.memory_space<vmem>>, vector<1x8x128xf32>,
    %c1_20 = arith.constant 1 : index
    %346 = arith.index_cast %3 : i32 to index
    %c0_21 = arith.constant 0 : index
    %347 = vector.load %arg3[%c1_20, %346, %c0_21] : memref<3x8x128xf32, #tpu.memory_space<vmem>>, vector<1x8x128xf32>
    %348 = vector.shape_cast %347 : vector<1x8x128xf32> to vector<8x128xf32>
    %349 = vector.shape_cast %337 : vector<8x128xf32> to vector<1x8x128xf32>
    tpu.vector_store %arg3[%c1_20, %346, %c0_21], %349 {strides = array<i32>} : memref<3x8x128xf32, #tpu.memory_space<vmem>>, vector<1x8x128xf32>,
    %c2_22 = arith.constant 2 : index
    %350 = arith.index_cast %3 : i32 to index
    %c0_23 = arith.constant 0 : index
    %351 = vector.load %arg3[%c2_22, %350, %c0_23] : memref<3x8x128xf32, #tpu.memory_space<vmem>>, vector<1x8x128xf32>
    %352 = vector.shape_cast %351 : vector<1x8x128xf32> to vector<8x128xf32>
    %353 = vector.shape_cast %341 : vector<8x128xf32> to vector<1x8x128xf32>
    tpu.vector_store %arg3[%c2_22, %350, %c0_23], %353 {strides = array<i32>} : memref<3x8x128xf32, #tpu.memory_space<vmem>>, vector<1x8x128xf32>,
    %c1_i32_24 = arith.constant 1 : i32
    return
  }
  func.func @transform_0(%arg0: i32) -> i32 {
    %c0_i32 = arith.constant 0 : i32
    %c0_i32_0 = arith.constant 0 : i32
    return %c0_i32 : i32
  }
  func.func @transform_1(%arg0: i32) -> (i32, i32, i32) {
    %c0_i32 = arith.constant 0 : i32
    %c0_i32_0 = arith.constant 0 : i32
    %c0_i32_1 = arith.constant 0 : i32
    return %c0_i32, %arg0, %c0_i32_0 : i32, i32, i32
  }
  func.func @transform_2(%arg0: i32) -> (i32, i32, i32) {
    %c0_i32 = arith.constant 0 : i32
    %c0_i32_0 = arith.constant 0 : i32
    %c0_i32_1 = arith.constant 0 : i32
    return %c0_i32, %arg0, %c0_i32_0 : i32, i32, i32
  }
}

</mosaic_0001>

<bundles_post_ra>
// kernel: iris_mlp.1
= control target key start
LH: loop header
LB: loop body
LE: loop exit
PB: predicated region body
PF: predicated region fallthrough
CT: control target
= control target key end

     0   :  { %7 = vsyncpa [#allocation3], 0  ;;  %s467_s12 = smov [#allocation2]   ;;  %s738_s0 = inlined_call_operand.vmem [shape: f32[83], index: 0, kind: input, shape index: {}]   ;;  %s739_s1 = inlined_call_operand.vmem [shape: f32[4,8,128], index: 1, kind: input, shape index: {}]   ;;  %s740_s2 = inlined_call_operand.vmem [shape: f32[3,8,128], index: 2, kind: output, shape index: {}]  }
   0x1   :  { %s13_s11 = sshll.u32 %s738_s0, 4  ;;  %s14_s11 = int_to_ptr.vmem [resolvable:$true] %s13_s11 }
   0x2   :  { %16 = dma.vmem_to_smem %s14_s11, 16, %s467_s12, [#allocation3]  }
   0x3   :  { %465 = dma.done.wait [#allocation3], 16  }
   0x4   :  { %466 = vsyncadd [#allocation3], 4294967280 }
   0x5   :  { %23 = sfence }
   0x6   :  { %s486_s13 = sld [smem:[#allocation2 + $0x50]]  ;;  %v507_v0 = vld [vmem:[%s739_s1] sm:$0xff]  ;;  %v512_v1 = vld [vmem:[%s739_s1 + $0x8] sm:$0xff]  ;;  %v527_v6 = vld [vmem:[%s739_s1 + $0x10] sm:$0xff] }
   0x7   :  { %s488_s14 = sld [smem:[#allocation2 + $0x51]]  ;;  %v537_v12 = vld [vmem:[%s739_s1 + $0x18] sm:$0xff] }
   0x8   :  { %s490_s15 = sld [smem:[#allocation2 + $0x52]] }
   0x9   :  { %s40_s16 = sld [smem:[#allocation2]] }
   0xa   :  { %s371_s17 = sld [smem:[#allocation2 + $0xa]] }
   0xb   :  { %s372_s18 = sld [smem:[#allocation2 + $0x14]] }
   0xc   :  { %s492_s19 = sld [smem:[#allocation2 + $0x1e]]  ;;  %v35_v51 = vstv %s486_s13 }
   0xd   :  { %s494_s20 = sld [smem:[#allocation2 + $0x28]] }
   0xe   :  { %s496_s0 = sld [smem:[#allocation2 + $0x32]] }
   0xf   :  { %s498_s21 = sld [smem:[#allocation2 + $0x33]]  ;;  %v41_v2 = vstv %s40_s16 }
  0x10   :  { %s500_s22 = sld [smem:[#allocation2 + $0x34]]  ;;  %v44_v3 = vstv %s371_s17  ;;  %v42_v4 = vmul.f32 %v41_v2, %v507_v0 }
  0x11   :  { %s378_s23 = sld [smem:[#allocation2 + $0x1]]  ;;  %v45_v5 = vmul.f32 %v512_v1, %v44_v3  ;;  %v48_v7 = vstv %s372_s18  ;;  %v37_v3 = vstv %s488_s14 }
  0x12   :  { %s379_s24 = sld [smem:[#allocation2 + $0xb]]  ;;  %v49_v9 = vmul.f32 %v527_v6, %v48_v7  ;;  %v52_v13 = vstv %s492_s19 }
  0x13   :  { %s502_s25 = sld [smem:[#allocation2 + $0x15]]  ;;  %v46_v8 = vadd.f32 %v45_v5, %v42_v4  ;;  %v53_v17 = vmul.f32 %v537_v12, %v52_v13  ;;  %v56_v27 = vstv %s494_s20  ;;  %v39_v4 = vstv %s490_s15 }
  0x14   :  { %s514_s30 = sld [smem:[#allocation2 + $0x1f]]  ;;  %v60_v45 = vstv %s496_s0 }
  0x15   :  { %s516_s3 = sld [smem:[#allocation2 + $0x29]]  ;;  %v50_v16 = vadd.f32 %v49_v9, %v46_v8  ;;  %v64_v46 = vstv %s498_s21 }
  0x16   :  { %s518_s4 = sld [smem:[#allocation2 + $0x35]]  ;;  %v68_v47 = vstv %s500_s22 }
  0x17   :  { %s522_s5 = sld [smem:[#allocation2 + $0x36]]  ;;  %v72_v10 = vstv %s378_s23  ;;  %v54_v23 = vadd.f32 %v53_v17, %v50_v16 }
  0x18   :  { %s529_s8 = sld [smem:[#allocation2 + $0x37]]  ;;  %v75_v11 = vstv %s379_s24  ;;  %v73_v14 = vmul.f32 %v72_v10, %v507_v0 }
  0x19   :  { %s386_s9 = sld [smem:[#allocation2 + $0x2]]  ;;  %v76_v15 = vmul.f32 %v512_v1, %v75_v11  ;;  %v79_v18 = vstv %s502_s25  ;;  %v57_v31 = vadd.f32 %v56_v27, %v54_v23 }
  0x1a   :  { %s387_s10 = sld [smem:[#allocation2 + $0xc]]  ;;  %v80_v22 = vmul.f32 %v527_v6, %v79_v18  ;;  %v83_v24 = vstv %s514_s30 }
  0x1b   :  { %s532_s11 = sld [smem:[#allocation2 + $0x16]]  ;;  %v77_v21 = vadd.f32 %v76_v15, %v73_v14  ;;  %v84_v30 = vmul.f32 %v537_v12, %v83_v24  ;;  %v58_v41 = vmax.f32 %v57_v31, 0.0  ;;  %v87_v42 = vstv %s516_s3 }
  0x1c   :  { %s540_s17 = sld [smem:[#allocation2 + $0x20]]  ;;  %v91_v7 = vstv %s518_s4 }
  0x1d   :  { %s542_s18 = sld [smem:[#allocation2 + $0x2a]]  ;;  %v81_v29 = vadd.f32 %v80_v22, %v77_v21  ;;  %v61_v53 = vmul.f32 %v60_v45, %v58_v41  ;;  %v65_v54 = vmul.f32 %v64_v46, %v58_v41  ;;  %v69_v55 = vmul.f32 %v68_v47, %v58_v41 }
  0x1e   :  { %s546_s26 = sld [smem:[#allocation2 + $0x38]]  ;;  %v95_v8 = vstv %s522_s5  ;;  %v99_v11 = vstv %s529_s8 }
  0x1f   :  { %s550_s1 = sld [smem:[#allocation2 + $0x39]]  ;;  %v103_v19 = vstv %s386_s9  ;;  %v85_v39 = vadd.f32 %v84_v30, %v81_v29  ;;  %v62_v10 = vadd.f32 %v61_v53, %v35_v51  ;;  %v66_v15 = vadd.f32 %v65_v54, %v37_v3 }
  0x20   :  { %v106_v20 = vstv %s387_s10  ;;  %s552_s19 = sld [smem:[#allocation2 + $0x3a]]  ;;  %v104_v25 = vmul.f32 %v103_v19, %v507_v0  ;;  %v70_v16 = vadd.f32 %v69_v55, %v39_v4 }
  0x21   :  { %s394_s23 = sld [smem:[#allocation2 + $0x3]]  ;;  %v107_v26 = vmul.f32 %v512_v1, %v106_v20  ;;  %v110_v28 = vstv %s532_s11  ;;  %v88_v52 = vadd.f32 %v87_v42, %v85_v39 }
  0x22   :  { %s395_s24 = sld [smem:[#allocation2 + $0xd]]  ;;  %v111_v33 = vmul.f32 %v527_v6, %v110_v28  ;;  %v114_v34 = vstv %s540_s17 }
  0x23   :  { %s558_s27 = sld [smem:[#allocation2 + $0x17]]  ;;  %v108_v32 = vadd.f32 %v107_v26, %v104_v25  ;;  %v115_v44 = vmul.f32 %v537_v12, %v114_v34  ;;  %v118_v57 = vstv %s542_s18  ;;  %v89_v5 = vmax.f32 %v88_v52, 0.0 }
  0x24   :  { %s562_s25 = sld [smem:[#allocation2 + $0x21]]  ;;  %v122_v21 = vstv %s546_s26 }
  0x25   :  { %s564_s28 = sld [smem:[#allocation2 + $0x2b]]  ;;  %v112_v43 = vadd.f32 %v111_v33, %v108_v32  ;;  %v92_v19 = vmul.f32 %v91_v7, %v89_v5  ;;  %v96_v20 = vmul.f32 %v95_v8, %v89_v5  ;;  %v100_v23 = vmul.f32 %v99_v11, %v89_v5 }
  0x26   :  { %s567_s29 = sld [smem:[#allocation2 + $0x3b]]  ;;  %v126_v25 = vstv %s550_s1  ;;  %v130_v26 = vstv %s552_s19 }
  0x27   :  { %s570_s30 = sld [smem:[#allocation2 + $0x3c]]  ;;  %v134_v35 = vstv %s394_s23  ;;  %v116_v56 = vadd.f32 %v115_v44, %v112_v43  ;;  %v101_v42 = vadd.f32 %v100_v23, %v70_v16 }
  0x28   :  { %v137_v36 = vstv %s395_s24  ;;  %s573_s20 = sld [smem:[#allocation2 + $0x3d]]  ;;  %v135_v37 = vmul.f32 %v134_v35, %v507_v0  ;;  %v93_v35 = vadd.f32 %v92_v19, %v62_v10 }
  0x29   :  { %v138_v38 = vmul.f32 %v512_v1, %v137_v36  ;;  %s577_s6 = sld [smem:[#allocation2 + $0x4]]  ;;  %v141_v40 = vstv %s558_s27  ;;  %v119_v9 = vadd.f32 %v118_v57, %v116_v56  ;;  %v97_v36 = vadd.f32 %v96_v20, %v66_v15 }
  0x2a   :  { %s403_s7 = sld [smem:[#allocation2 + $0xe]]  ;;  %v142_v49 = vmul.f32 %v527_v6, %v141_v40  ;;  %v145_v50 = vstv %s562_s25 }
  0x2b   :  { %s582_s9 = sld [smem:[#allocation2 + $0x18]]  ;;  %v139_v48 = vadd.f32 %v138_v38, %v135_v37  ;;  %v146_v58 = vmul.f32 %v537_v12, %v145_v50  ;;  %v149_v22 = vstv %s564_s28  ;;  %v120_v24 = vmax.f32 %v119_v9, 0.0 }
  0x2c   :  { %s587_s10 = sld [smem:[#allocation2 + $0x22]]  ;;  %v153_v47 = vstv %s567_s29 }
  0x2d   :  { %s591_s11 = sld [smem:[#allocation2 + $0x2c]]  ;;  %v143_v61 = vadd.f32 %v142_v49, %v139_v48  ;;  %v123_v38 = vmul.f32 %v122_v21, %v120_v24  ;;  %v127_v39 = vmul.f32 %v126_v25, %v120_v24  ;;  %v131_v43 = vmul.f32 %v130_v26, %v120_v24 }
  0x2e   :  { %s594_s3 = sld [smem:[#allocation2 + $0x3e]]  ;;  %v157_v52 = vstv %s570_s30  ;;  %v161_v53 = vstv %s573_s20 }
  0x2f   :  { %s596_s0 = sld [smem:[#allocation2 + $0x3f]]  ;;  %v165_v59 = vstv %s577_s6  ;;  %v147_v17 = vadd.f32 %v146_v58, %v143_v61  ;;  %v124_v50 = vadd.f32 %v123_v38, %v93_v35  ;;  %v128_v51 = vadd.f32 %v127_v39, %v97_v36 }
  0x30   :  { %v168_v60 = vstv %s403_s7  ;;  %s601_s13 = sld [smem:[#allocation2 + $0x40]]  ;;  %v166_v62 = vmul.f32 %v165_v59, %v507_v0  ;;  %v132_v54 = vadd.f32 %v131_v43, %v101_v42 }
  0x31   :  { %v169_v63 = vmul.f32 %v512_v1, %v168_v60  ;;  %v172_v2 = vstv %s582_s9  ;;  %s606_s21 = sld [smem:[#allocation2 + $0x5]]  ;;  %v150_v31 = vadd.f32 %v149_v22, %v147_v17 }
  0x32   :  { %s610_s22 = sld [smem:[#allocation2 + $0xf]]  ;;  %v173_v14 = vmul.f32 %v527_v6, %v172_v2  ;;  %v176_v18 = vstv %s587_s10 }
  0x33   :  { %s614_s12 = sld [smem:[#allocation2 + $0x19]]  ;;  %v170_v13 = vadd.f32 %v169_v63, %v166_v62  ;;  %v177_v28 = vmul.f32 %v537_v12, %v176_v18  ;;  %v151_v45 = vmax.f32 %v150_v31, 0.0  ;;  %v180_v46 = vstv %s591_s11 }
  0x34   :  { %s618_s14 = sld [smem:[#allocation2 + $0x23]]  ;;  %v184_v10 = vstv %s594_s3 }
  0x35   :  { %s621_s15 = sld [smem:[#allocation2 + $0x2d]]  ;;  %v174_v27 = vadd.f32 %v173_v14, %v170_v13  ;;  %v154_v58 = vmul.f32 %v153_v47, %v151_v45  ;;  %v158_v62 = vmul.f32 %v157_v52, %v151_v45  ;;  %v162_v4 = vmul.f32 %v161_v53, %v151_v45 }
  0x36   :  { %s625_s4 = sld [smem:[#allocation2 + $0x41]]  ;;  %v188_v14 = vstv %s596_s0  ;;  %v192_v15 = vstv %s601_s13 }
  0x37   :  { %s629_s5 = sld [smem:[#allocation2 + $0x42]]  ;;  %v196_v29 = vstv %s606_s21  ;;  %v178_v44 = vadd.f32 %v177_v28, %v174_v27  ;;  %v155_v13 = vadd.f32 %v154_v58, %v124_v50  ;;  %v159_v17 = vadd.f32 %v158_v62, %v128_v51 }
  0x38   :  { %v199_v30 = vstv %s610_s22  ;;  %s634_s8 = sld [smem:[#allocation2 + $0x43]]  ;;  %v197_v32 = vmul.f32 %v196_v29, %v507_v0  ;;  %v163_v18 = vadd.f32 %v162_v4, %v132_v54 }
  0x39   :  { %v200_v33 = vmul.f32 %v512_v1, %v199_v30  ;;  %v203_v34 = vstv %s614_s12  ;;  %s639_s16 = sld [smem:[#allocation2 + $0x6]]  ;;  %v181_v55 = vadd.f32 %v180_v46, %v178_v44 }
  0x3a   :  { %v204_v37 = vmul.f32 %v527_v6, %v203_v34  ;;  %s419_s17 = sld [smem:[#allocation2 + $0x10]]  ;;  %v207_v41 = vstv %s618_s14 }
  0x3b   :  { %v201_v40 = vadd.f32 %v200_v33, %v197_v32  ;;  %s420_s18 = sld [smem:[#allocation2 + $0x1a]]  ;;  %v208_v49 = vmul.f32 %v537_v12, %v207_v41  ;;  %v211_v5 = vstv %s621_s15  ;;  %v182_v9 = vmax.f32 %v181_v55, 0.0 }
  0x3c   :  { %s643_s26 = sld [smem:[#allocation2 + $0x24]]  ;;  %v215_v19 = vstv %s625_s4 }
  0x3d   :  { %s646_s1 = sld [smem:[#allocation2 + $0x2e]]  ;;  %v205_v48 = vadd.f32 %v204_v37, %v201_v40  ;;  %v185_v21 = vmul.f32 %v184_v10, %v182_v9  ;;  %v189_v25 = vmul.f32 %v188_v14, %v182_v9  ;;  %v193_v29 = vmul.f32 %v192_v15, %v182_v9 }
  0x3e   :  { %s650_s19 = sld [smem:[#allocation2 + $0x44]]  ;;  %v219_v33 = vstv %s629_s5  ;;  %v223_v37 = vstv %s634_s8 }
  0x3f   :  { %s654_s23 = sld [smem:[#allocation2 + $0x45]]  ;;  %v227_v56 = vstv %s639_s16  ;;  %v209_v63 = vadd.f32 %v208_v49, %v205_v48  ;;  %v186_v38 = vadd.f32 %v185_v21, %v155_v13  ;;  %v190_v39 = vadd.f32 %v189_v25, %v159_v17 }
  0x40   :  { %v230_v57 = vstv %s419_s17  ;;  %s657_s24 = sld [smem:[#allocation2 + $0x46]]  ;;  %v228_v59 = vmul.f32 %v227_v56, %v507_v0  ;;  %v194_v41 = vadd.f32 %v193_v29, %v163_v18 }
  0x41   :  { %v231_v60 = vmul.f32 %v512_v1, %v230_v57  ;;  %v234_v61 = vstv %s420_s18  ;;  %s661_s27 = sld [smem:[#allocation2 + $0x7]]  ;;  %v212_v16 = vadd.f32 %v211_v5, %v209_v63 }
  0x42   :  { %v235_v2 = vmul.f32 %v527_v6, %v234_v61  ;;  %v238_v3 = vstv %s643_s26  ;;  %s427_s25 = sld [smem:[#allocation2 + $0x11]] }
  0x43   :  { %v232_v7 = vadd.f32 %v231_v60, %v228_v59  ;;  %v239_v8 = vmul.f32 %v537_v12, %v238_v3  ;;  %s428_s28 = sld [smem:[#allocation2 + $0x1b]]  ;;  %v242_v22 = vstv %s646_s1  ;;  %v213_v30 = vmax.f32 %v212_v16, 0.0 }
  0x44   :  { %s667_s29 = sld [smem:[#allocation2 + $0x25]]  ;;  %v246_v47 = vstv %s650_s19 }
  0x45   :  { %v236_v11 = vadd.f32 %v235_v2, %v232_v7  ;;  %s670_s30 = sld [smem:[#allocation2 + $0x2f]]  ;;  %v216_v42 = vmul.f32 %v215_v19, %v213_v30  ;;  %v220_v43 = vmul.f32 %v219_v33, %v213_v30  ;;  %v224_v45 = vmul.f32 %v223_v37, %v213_v30 }
  0x46   :  { %s674_s20 = sld [smem:[#allocation2 + $0x47]]  ;;  %v250_v49 = vstv %s654_s23  ;;  %v254_v50 = vstv %s657_s24 }
  0x47   :  { %v240_v20 = vadd.f32 %v239_v8, %v236_v11  ;;  %s677_s6 = sld [smem:[#allocation2 + $0x48]]  ;;  %v258_v23 = vstv %s661_s27  ;;  %v217_v57 = vadd.f32 %v216_v42, %v186_v38  ;;  %v221_v58 = vadd.f32 %v220_v43, %v190_v39 }
  0x48   :  { %v261_v24 = vstv %s427_s25  ;;  %s681_s7 = sld [smem:[#allocation2 + $0x49]]  ;;  %v259_v26 = vmul.f32 %v258_v23, %v507_v0  ;;  %v225_v3 = vadd.f32 %v224_v45, %v194_v41 }
  0x49   :  { %v262_v27 = vmul.f32 %v512_v1, %v261_v24  ;;  %v265_v28 = vstv %s428_s28  ;;  %s685_s9 = sld [smem:[#allocation2 + $0x8]]  ;;  %v243_v34 = vadd.f32 %v242_v22, %v240_v20 }
  0x4a   :  { %v266_v31 = vmul.f32 %v527_v6, %v265_v28  ;;  %v269_v32 = vstv %s667_s29  ;;  %s435_s10 = sld [smem:[#allocation2 + $0x12]] }
  0x4b   :  { %v263_v35 = vadd.f32 %v262_v27, %v259_v26  ;;  %v270_v36 = vmul.f32 %v537_v12, %v269_v32  ;;  %s436_s11 = sld [smem:[#allocation2 + $0x1c]]  ;;  %v273_v44 = vstv %s670_s30  ;;  %v244_v46 = vmax.f32 %v243_v34, 0.0 }
  0x4c   :  { %s692_s3 = sld [smem:[#allocation2 + $0x26]]  ;;  %v277_v7 = vstv %s674_s20 }
  0x4d   :  { %v267_v40 = vadd.f32 %v266_v31, %v263_v35  ;;  %s694_s0 = sld [smem:[#allocation2 + $0x30]]  ;;  %v247_v61 = vmul.f32 %v246_v47, %v244_v46  ;;  %v251_v62 = vmul.f32 %v250_v49, %v244_v46  ;;  %v255_v4 = vmul.f32 %v254_v50, %v244_v46 }
  0x4e   :  { %s697_s13 = sld [smem:[#allocation2 + $0x4a]]  ;;  %v281_v9 = vstv %s677_s6  ;;  %v285_v14 = vstv %s681_s7 }
  0x4f   :  { %v271_v48 = vadd.f32 %v270_v36, %v267_v40  ;;  %s700_s21 = sld [smem:[#allocation2 + $0x4b]]  ;;  %v289_v51 = vstv %s685_s9  ;;  %v248_v11 = vadd.f32 %v247_v61, %v217_v57  ;;  %v252_v13 = vadd.f32 %v251_v62, %v221_v58 }
  0x50   :  { %v292_v52 = vstv %s435_s10  ;;  %s705_s22 = sld [smem:[#allocation2 + $0x4c]]  ;;  %v290_v54 = vmul.f32 %v289_v51, %v507_v0  ;;  %v256_v16 = vadd.f32 %v255_v4, %v225_v3 }
  0x51   :  { %v274_v53 = vadd.f32 %v273_v44, %v271_v48  ;;  %v293_v55 = vmul.f32 %v512_v1, %v292_v52  ;;  %v296_v56 = vstv %s436_s11  ;;  %s442_s12 = sld [smem:[#allocation2 + $0x9]] }
  0x52   :  { %v297_v59 = vmul.f32 %v527_v6, %v296_v56  ;;  %v300_v60 = vstv %s692_s3  ;;  %s443_s14 = sld [smem:[#allocation2 + $0x13]] }
  0x53   :  { %v294_v63 = vadd.f32 %v293_v55, %v290_v54  ;;  %v301_v2 = vmul.f32 %v537_v12, %v300_v60  ;;  %s444_s15 = sld [smem:[#allocation2 + $0x1d]]  ;;  %v275_v5 = vmax.f32 %v274_v53, 0.0  ;;  %v304_v10 = vstv %s694_s0 }
  0x54   :  { %s445_s4 = sld [smem:[#allocation2 + $0x27]]  ;;  %v308_v31 = vstv %s697_s13 }
  0x55   :  { %v298_v8 = vadd.f32 %v297_v59, %v294_v63  ;;  %s715_s5 = sld [smem:[#allocation2 + $0x31]]  ;;  %v278_v17 = vmul.f32 %v277_v7, %v275_v5  ;;  %v282_v24 = vmul.f32 %v281_v9, %v275_v5  ;;  %v286_v25 = vmul.f32 %v285_v14, %v275_v5 }
  0x56   :  { %s718_s8 = sld [smem:[#allocation2 + $0x4d]]  ;;  %v312_v32 = vstv %s700_s21  ;;  %v316_v33 = vstv %s705_s22 }
  0x57   :  { %v302_v15 = vadd.f32 %v301_v2, %v298_v8  ;;  %v320_v18 = vstv %s442_s12  ;;  %s448_s16 = sld [smem:[#allocation2 + $0x4e]]  ;;  %v279_v34 = vadd.f32 %v278_v17, %v248_v11  ;;  %v287_v35 = vadd.f32 %v286_v25, %v256_v16 }
  0x58   :  { %v323_v19 = vstv %s443_s14  ;;  %v321_v21 = vmul.f32 %v320_v18, %v507_v0  ;;  %s449_s17 = sld [smem:[#allocation2 + $0x4f]] }
  0x59   :  { %v305_v20 = vadd.f32 %v304_v10, %v302_v15  ;;  %v324_v22 = vmul.f32 %v512_v1, %v323_v19  ;;  %v327_v23 = vstv %s444_s15  ;;  %v283_v1 = vadd.f32 %v282_v24, %v252_v13 }
  0x5a   :  { %v328_v26 = vmul.f32 %v527_v6, %v327_v23  ;;  %v331_v27 = vstv %s445_s4 }
  0x5b   :  { %v306_v28 = vmax.f32 %v305_v20, 0.0  ;;  %v325_v29 = vadd.f32 %v324_v22, %v321_v21  ;;  %v332_v30 = vmul.f32 %v537_v12, %v331_v27  ;;  %v335_v36 = vstv %s715_s5 }
  0x5c   :  { %v339_v41 = vstv %s718_s8 }
  0x5d   :  { %v329_v0 = vadd.f32 %v328_v26, %v325_v29  ;;  %v309_v37 = vmul.f32 %v308_v31, %v306_v28  ;;  %v313_v38 = vmul.f32 %v312_v32, %v306_v28  ;;  %v317_v39 = vmul.f32 %v316_v33, %v306_v28 }
  0x5e   :  { %v343_v42 = vstv %s448_s16  ;;  %v347_v43 = vstv %s449_s17 }
  0x5f   :  { %v333_v40 = vadd.f32 %v332_v30, %v329_v0  ;;  %v310_v44 = vadd.f32 %v309_v37, %v279_v34  ;;  %v314_v45 = vadd.f32 %v313_v38, %v283_v1  ;;  %v318_v46 = vadd.f32 %v317_v39, %v287_v35 }
  0x61   :  { %v336_v6 = vadd.f32 %v335_v36, %v333_v40 }
  0x63   :  { %v337_v12 = vmax.f32 %v336_v6, 0.0 }
  0x65   :  { %v340_v47 = vmul.f32 %v339_v41, %v337_v12  ;;  %v344_v48 = vmul.f32 %v343_v42, %v337_v12  ;;  %v348_v49 = vmul.f32 %v347_v43, %v337_v12 }
  0x67   :  { %v341_v50 = vadd.f32 %v340_v47, %v310_v44  ;;  %v345_v51 = vadd.f32 %v344_v48, %v314_v45  ;;  %v349_v52 = vadd.f32 %v348_v49, %v318_v46 }
  0x69   :  { %350 = vst [vmem:[%s740_s2] sm:$0xff] %v341_v50 }
  0x6a   :  { %450 = vst [vmem:[%s740_s2 + $0x8] sm:$0xff] %v345_v51 }
  0x6b   :  { %451 = vst [vmem:[%s740_s2 + $0x10] sm:$0xff] %v349_v52 }
  0x6c   :  { %359 = vsyncpa [#allocation3], 1 }

</bundles_post_ra>
